<compile_context>
chip_gen: v5e
topology: v5e:2x2
jax: 0.10.0
libtpu: 0.0.40
codegen_flags: <defaults>
</compile_context>

<pallas_src>
import functools

import jax
import jax.numpy as jnp
from jax import lax
from jax.experimental import pallas as pl
from jax.experimental.pallas import tpu as pltpu

EPS = 1e-5


def _ru(x, m):
    return ((x + m - 1) // m) * m


@functools.lru_cache(maxsize=None)
def _vmem_limit_bytes():
    """Per-generation scoped-VMEM budget (75% of physical capacity, safe fallback)."""
    try:
        cap = int(pltpu.get_tpu_info().vmem_capacity_bytes)
    except Exception:
        cap = 64 * 1024 * 1024          # conservative (v7x-sized) fallback
    return max(32 * 1024 * 1024, int(cap * 0.75))


def _choose_tm(M):
    M8 = _ru(M, 8)
    if M8 % 256 == 0:
        return 256, M8
    if M8 >= 128:
        return 128, _ru(M8, 128)
    return M8, M8


def _choose_tk(Kp):
    if Kp <= 1024:
        return Kp
    for tk in (1024, 896, 768, 640, 512, 384, 256, 128):
        if Kp % tk == 0:
            return tk
    return 128


# --------------------------------------------------------------------------
# Pallas kernels
# --------------------------------------------------------------------------
def _mm_kernel(apply_relu, has_residual, *refs):
    """Tiled: acc += A_tile @ W_tile; epilogue = acc*scale + shift (+res) (+relu)."""
    if has_residual:
        a_ref, w_ref, s_ref, b_ref, r_ref, o_ref, acc_ref = refs
    else:
        a_ref, w_ref, s_ref, b_ref, o_ref, acc_ref = refs
        r_ref = None
    k = pl.program_id(2)

    @pl.when(k == 0)
    def _init():
        acc_ref[...] = jnp.zeros_like(acc_ref)

    acc_ref[...] += jnp.dot(a_ref[...], w_ref[...],
                            preferred_element_type=jnp.float32)

    @pl.when(k == pl.num_programs(2) - 1)
    def _finalize():
        acc = acc_ref[...] * s_ref[...] + b_ref[...]
        if r_ref is not None:
            acc = acc + r_ref[...].astype(jnp.float32)
        if apply_relu:
            acc = jnp.maximum(acc, 0.0)
        o_ref[...] = acc.astype(o_ref.dtype)


def matmul_affine(A, W, scale, shift, *, relu, residual=None,
                  out_dtype=jnp.bfloat16):
    """Fused (M,K)@(K,N) * scale + shift [+ residual] [relu].

    A: (M, K) bf16 activations (im2col rows); W: (K, N) pre-packed bf16 weights
    (K, N already padded to multiples of 128); scale/shift: (1, N) f32.
    """
    M, K = A.shape
    Kp, Np = W.shape
    assert K == Kp, (K, Kp)
    tm, Mp = _choose_tm(M)
    tn = 256 if (Np % 256 == 0) else 128
    tk = _choose_tk(Kp)

    if Mp != M:
        A = jnp.pad(A, ((0, Mp - M), (0, 0)))
        if residual is not None:
            residual = jnp.pad(residual, ((0, Mp - M), (0, 0)))

    grid = (Mp // tm, Np // tn, Kp // tk)
    in_specs = [
        pl.BlockSpec((tm, tk), lambda i, j, k: (i, k)),
        pl.BlockSpec((tk, tn), lambda i, j, k: (k, j)),
        pl.BlockSpec((1, tn), lambda i, j, k: (0, j)),
        pl.BlockSpec((1, tn), lambda i, j, k: (0, j)),
    ]
    args = [A.astype(jnp.bfloat16), W, scale, shift]
    has_res = residual is not None
    if has_res:
        in_specs.append(pl.BlockSpec((tm, tn), lambda i, j, k: (i, j)))
        args.append(residual.astype(jnp.bfloat16))

    out = pl.pallas_call(
        functools.partial(_mm_kernel, relu, has_res),
        out_shape=jax.ShapeDtypeStruct((Mp, Np), out_dtype),
        grid=grid,
        in_specs=in_specs,
        out_specs=pl.BlockSpec((tm, tn), lambda i, j, k: (i, j)),
        scratch_shapes=[pltpu.VMEM((tm, tn), jnp.float32)],
        compiler_params=pltpu.CompilerParams(
            dimension_semantics=("parallel", "parallel", "arbitrary"),
            vmem_limit_bytes=_vmem_limit_bytes()),
    )(*args)
    return out[:M] if Mp != M else out


def _maxpool_kernel(t0_ref, t1_ref, t2_ref, o_ref):
    # each ref: (3, 1, 1, OW, C) = the 3 horizontal taps of one input row
    m = jnp.maximum(jnp.maximum(t0_ref[...], t1_ref[...]), t2_ref[...])
    o_ref[...] = jnp.max(m, axis=0)


def _tap_index_map(r, n, oh):
    return (0, n, 2 * oh + r, 0, 0)


def max_pool_3x3_s2_p1(x):
    """3x3 / stride-2 / pad-1 max pool, NHWC (C padded to 128)."""
    N, H, W_, C = x.shape
    xp = jnp.pad(x, ((0, 0), (1, 1), (1, 1), (0, 0)),
                 constant_values=-jnp.inf)
    Hp, Wp = H + 2, W_ + 2
    OH = (Hp - 3) // 2 + 1
    OW = (Wp - 3) // 2 + 1
    # Pre-slice the three horizontal taps once (~1.5x of the padded input); the
    # kernel then consumes three vertically-shifted rows per output row.
    taps = jnp.stack(
        [xp[:, :, kw:kw + 2 * (OW - 1) + 1:2, :] for kw in range(3)], axis=0)
    # taps: (3, N, Hp, OW, C)
    in_specs = [
        pl.BlockSpec((3, 1, 1, OW, C), functools.partial(_tap_index_map, r))
        for r in range(3)
    ]
    return pl.pallas_call(
        _maxpool_kernel,
        out_shape=jax.ShapeDtypeStruct((N, OH, OW, C), x.dtype),
        grid=(N, OH),
        in_specs=in_specs,
        out_specs=pl.BlockSpec((1, 1, OW, C), lambda n, oh: (n, oh, 0, 0)),
        compiler_params=pltpu.CompilerParams(
            dimension_semantics=("parallel", "parallel"),
            vmem_limit_bytes=_vmem_limit_bytes()),
    )(taps, taps, taps)


def _avg_kernel(inv, x_ref, o_ref):
    o_ref[...] = (jnp.sum(x_ref[...].astype(jnp.float32), axis=1)
                  * inv).astype(o_ref.dtype)


def global_avg_pool(x):
    """NHWC -> (N, C): AdaptiveAvgPool2d((1,1)) + squeeze (batch kept)."""
    N, H, W_, C = x.shape
    xf = x.reshape(N, H * W_, C)
    assert C % 128 == 0
    return pl.pallas_call(
        functools.partial(_avg_kernel, 1.0 / (H * W_)),
        out_shape=jax.ShapeDtypeStruct((N, C), jnp.bfloat16),
        grid=(C // 128,),
        in_specs=[pl.BlockSpec((N, H * W_, 128), lambda c: (0, 0, c))],
        out_specs=pl.BlockSpec((N, 128), lambda c: (0, c)),
        compiler_params=pltpu.CompilerParams(
            dimension_semantics=("parallel",),
            vmem_limit_bytes=_vmem_limit_bytes()),
    )(xf)


# --------------------------------------------------------------------------
# Glue: im2col + ResNet18 wiring (activations NHWC, channels padded to 128)
# --------------------------------------------------------------------------
def extract_patches(x, kh, kw, stride, pad):
    """NHWC -> (N, OH, OW, KH*KW*Cin) patches, feature order (kh, kw, cin)."""
    # TODO(synk): implicit im2col (taps as extra K-reduction grid axes) would avoid
    #             materializing this tensor in HBM.
    if pad > 0:
        x = jnp.pad(x, ((0, 0), (pad, pad), (pad, pad), (0, 0)))
    N, H, W_, C = x.shape
    oh = (H - kh) // stride + 1
    ow = (W_ - kw) // stride + 1
    cols = []
    for i in range(kh):
        for j in range(kw):
            cols.append(x[:, i:i + (oh - 1) * stride + 1:stride,
                          j:j + (ow - 1) * stride + 1:stride, :])
    return jnp.concatenate(cols, axis=-1), oh, ow


def conv_bn(x, cw, stride, pad, *, relu, residual=None):
    N, H, W_, Cin = x.shape
    kh, kw = cw['kh'], cw['kw']
    patches, OH, OW = extract_patches(x, kh, kw, stride, pad)
    K = kh * kw * Cin
    A = patches.reshape(N * OH * OW, K)
    Kp, Np = cw['w'].shape
    if K != Kp:                               # only conv1 (Cin=3): pad K up to 128-multiple
        A = jnp.pad(A, ((0, 0), (0, Kp - K)))
    R = None if residual is None else residual.reshape(N * OH * OW, Np)
    out = matmul_affine(A, cw['w'], cw['scale'], cw['shift'],
                        relu=relu, residual=R)
    return out.reshape(N, OH, OW, Np)


def basic_block(x, blk):
    s = blk['stride']
    identity = x
    out = conv_bn(x, blk['conv1'], s, 1, relu=True)
    if 'down' in blk:
        identity = conv_bn(x, blk['down'], s, 0, relu=False)
    out = conv_bn(out, blk['conv2'], 1, 1, relu=True, residual=identity)
    return out


def cnn_embedder_forward(params, x_nchw, freeze=False):
    # layout: transpose PyTorch NCHW input to NHWC once; activations are bf16.
    x = jnp.transpose(x_nchw, (0, 2, 3, 1)).astype(jnp.bfloat16)
    x = conv_bn(x, params['conv1'], 2, 3, relu=True)
    x = max_pool_3x3_s2_p1(x)
    for name in ('layer1', 'layer2', 'layer3', 'layer4'):
        for blk in params[name]:
            x = basic_block(x, blk)
    if freeze:
        return jnp.transpose(x, (0, 3, 1, 2)).astype(jnp.float32)  # NCHW feature maps
    pooled = global_avg_pool(x)                                    # (N, 512)
    fc = params['fc']
    logits_full = matmul_affine(pooled, fc['w'], fc['scale'], fc['shift'],
                                relu=False, out_dtype=jnp.float32)
    return logits_full[:, :params['num_classes']]


# --------------------------------------------------------------------------
# One-time parameter packing (out of the hot path)
# --------------------------------------------------------------------------
def _prep_conv(w_oihw, scale, shift, cin_pad):
    cout, cin, kh, kw = w_oihw.shape
    w = jnp.zeros((cout, cin_pad, kh, kw), jnp.float32).at[:, :cin].set(w_oihw)
    Wm = jnp.transpose(w, (2, 3, 1, 0)).reshape(kh * kw * cin_pad, cout)
    K = kh * kw * cin_pad
    Kp, Np = _ru(K, 128), _ru(cout, 128)
    Wp_ = jnp.zeros((Kp, Np), jnp.bfloat16).at[:K, :cout].set(
        Wm.astype(jnp.bfloat16))
    sp = jnp.zeros((1, Np), jnp.float32).at[0, :cout].set(scale)
    bp = jnp.zeros((1, Np), jnp.float32).at[0, :cout].set(shift)
    return dict(w=Wp_, scale=sp, shift=bp, kh=kh, kw=kw, cout_pad=Np)


def _prep_fc(fc_w, fc_b):
    n, k = fc_w.shape                       # (num_classes, 512)
    Kp, Np = _ru(k, 128), _ru(n, 128)
    W = jnp.zeros((Kp, Np), jnp.bfloat16).at[:k, :n].set(
        fc_w.T.astype(jnp.bfloat16))
    s = jnp.zeros((1, Np), jnp.float32).at[0, :n].set(1.0)
    b = jnp.zeros((1, Np), jnp.float32).at[0, :n].set(fc_b)
    return dict(w=W, scale=s, shift=b)


def prepare_params(raw):
    p = {'conv1': _prep_conv(raw['conv1'], *raw['bn1'], cin_pad=3)}
    cpad = p['conv1']['cout_pad']
    for name in ('layer1', 'layer2', 'layer3', 'layer4'):
        blocks = []
        for blk in raw[name]:
            in_pad = cpad
            b = {'stride': blk['stride'],
                 'conv1': _prep_conv(blk['conv1'], *blk['bn1'], cin_pad=in_pad)}
            mid_pad = b['conv1']['cout_pad']
            b['conv2'] = _prep_conv(blk['conv2'], *blk['bn2'], cin_pad=mid_pad)
            if 'down_conv' in blk:
                b['down'] = _prep_conv(blk['down_conv'], *blk['down_bn'],
                                       cin_pad=in_pad)
            cpad = b['conv2']['cout_pad']
            blocks.append(b)
        p[name] = blocks
    p['fc'] = _prep_fc(raw['fc_w'], raw['fc_b'])
    p['num_classes'] = int(raw['fc_w'].shape[0])
    return p


# --------------------------------------------------------------------------
# Deterministic raw parameter init (ResNet18 shapes + Linear(512, num_classes))
# --------------------------------------------------------------------------
def _conv_init(key, cout, cin, k):
    fan_in = cin * k * k
    return jax.random.normal(key, (cout, cin, k, k), jnp.float32) * (2.0 / fan_in) ** 0.5


def _bn_init(c):
    gamma = jnp.ones((c,), jnp.float32)
    beta = jnp.zeros((c,), jnp.float32)
    running_mean = jnp.zeros((c,), jnp.float32)
    running_var = jnp.ones((c,), jnp.float32)
    scale = gamma / jnp.sqrt(running_var + EPS)
    shift = beta - running_mean * scale
    return scale, shift


def init_params(key, num_classes=2):
    keys = iter(jax.random.split(key, 64))
    p = {'conv1': _conv_init(next(keys), 64, 3, 7), 'bn1': _bn_init(64)}
    cfg = [('layer1', 64, 64, 1), ('layer2', 64, 128, 2),
           ('layer3', 128, 256, 2), ('layer4', 256, 512, 2)]
    for name, cin, cout, stride in cfg:
        blocks = []
        for b in range(2):
            bcin = cin if b == 0 else cout
            bstride = stride if b == 0 else 1
            blk = {
                'conv1': _conv_init(next(keys), cout, bcin, 3),
                'bn1': _bn_init(cout),
                'conv2': _conv_init(next(keys), cout, cout, 3),
                'bn2': _bn_init(cout),
                'stride': bstride,
            }
            if bstride != 1 or bcin != cout:
                blk['down_conv'] = _conv_init(next(keys), cout, bcin, 1)
                blk['down_bn'] = _bn_init(cout)
            blocks.append(blk)
        p[name] = blocks
    p['fc_w'] = jax.random.normal(next(keys), (num_classes, 512), jnp.float32) * (1.0 / 512) ** 0.5
    p['fc_b'] = jnp.zeros((num_classes,), jnp.float32)
    return p


# --------------------------------------------------------------------------
# Pure-JAX f32 reference (for correctness check)
# --------------------------------------------------------------------------
def reference_forward(params, x_nchw):
    x = jnp.transpose(x_nchw, (0, 2, 3, 1)).astype(jnp.float32)

    def conv(x, w, scale, shift, stride, pad, relu):
        y = lax.conv_general_dilated(
            x, jnp.transpose(w, (2, 3, 1, 0)), (stride, stride),
            [(pad, pad), (pad, pad)],
            dimension_numbers=('NHWC', 'HWIO', 'NHWC'),
            precision=lax.Precision.HIGHEST)
        y = y * scale + shift
        return jnp.maximum(y, 0.0) if relu else y

    x = conv(x, params['conv1'], *params['bn1'], 2, 3, True)
    x = lax.reduce_window(x, -jnp.inf, lax.max, (1, 3, 3, 1), (1, 2, 2, 1),
                          [(0, 0), (1, 1), (1, 1), (0, 0)])
    for name in ('layer1', 'layer2', 'layer3', 'layer4'):
        for blk in params[name]:
            s = blk['stride']
            identity = x
            out = conv(x, blk['conv1'], *blk['bn1'], s, 1, True)
            if 'down_conv' in blk:
                identity = conv(x, blk['down_conv'], *blk['down_bn'], s, 0, False)
            out = conv(out, blk['conv2'], *blk['bn2'], 1, 1, False) + identity
            x = jnp.maximum(out, 0.0)
    pooled = jnp.mean(x, axis=(1, 2))
    return pooled @ params['fc_w'].T + params['fc_b']


# --------------------------------------------------------------------------
if __name__ == "__main__":
    key = jax.random.PRNGKey(0)
    pkey, xkey = jax.random.split(key)
    raw_params = init_params(pkey, num_classes=2)
    params = prepare_params(raw_params)      # one-time weight packing (off the hot path)
    x = jax.random.normal(xkey, (2, 3, 16, 16), jnp.float32)  # NCHW like PyTorch

    out = cnn_embedder_forward(params, x)
    out = jax.block_until_ready(out)

    ref = reference_forward(raw_params, x)
    assert out.shape == (2, 2), out.shape
    # bf16 MXU operands + bf16 activations vs. an f32 HIGHEST reference -> looser
    # tolerance than the original all-f32 path; structural bugs would show O(1) errors.
    assert bool(jnp.allclose(out, ref, rtol=1e-1, atol=5e-2)), (out, ref)

    print("KERNEL_OK")
</pallas_src>

<mosaic_0001>
module attributes {stable_mosaic.version = 11 : i64} {
  func.func @_mm_kernel(%arg0: i32, %arg1: i32, %arg2: i32, %arg3: memref<128x256xbf16, #tpu.memory_space<vmem>>, %arg4: memref<256x128xbf16, #tpu.memory_space<vmem>>, %arg5: memref<1x128xf32, #tpu.memory_space<vmem>>, %arg6: memref<1x128xf32, #tpu.memory_space<vmem>>, %arg7: memref<128x128xbf16, #tpu.memory_space<vmem>>, %arg8: memref<128x128xf32, #tpu.memory_space<vmem>>) attributes {dimension_semantics = [#tpu.dimension_semantics<parallel>, #tpu.dimension_semantics<parallel>, #tpu.dimension_semantics<arbitrary>], iteration_bounds = array<i64: 1, 1, 1>, scalar_prefetch = 0 : i64, scratch_operands = 1 : i64, tpu.core_type = #tpu.core_type<tc>, window_params = [{transform_indices = @transform_0, window_bounds = array<i64: 128, 256>}, {transform_indices = @transform_1, window_bounds = array<i64: 256, 128>}, {transform_indices = @transform_2, window_bounds = array<i64: 1, 128>}, {transform_indices = @transform_3, window_bounds = array<i64: 1, 128>}, {transform_indices = @transform_4, window_bounds = array<i64: 128, 128>}]} {
    %c0_i32 = arith.constant 0 : i32
    %0 = arith.cmpi eq, %arg2, %c0_i32 : i32
    %1 = arith.extui %0 : i1 to i32
    %c0_i32_0 = arith.constant 0 : i32
    %2 = arith.cmpi ne, %1, %c0_i32_0 : i32
    scf.if %2 {
      %cst_10 = arith.constant 0.000000e+00 : f32
      %12 = vector.broadcast %cst_10 : f32 to vector<128x128xf32>
      %c0_11 = arith.constant 0 : index
      %c0_12 = arith.constant 0 : index
      %13 = vector.load %arg8[%c0_11, %c0_12] : memref<128x128xf32, #tpu.memory_space<vmem>>, vector<128x128xf32>
      tpu.vector_store %arg8[%c0_11, %c0_12], %12 {strides = array<i32>} : memref<128x128xf32, #tpu.memory_space<vmem>>, vector<128x128xf32>,
    } else {
    }
    %c0 = arith.constant 0 : index
    %c0_1 = arith.constant 0 : index
    %3 = vector.load %arg8[%c0, %c0_1] : memref<128x128xf32, #tpu.memory_space<vmem>>, vector<128x128xf32>
    %c0_2 = arith.constant 0 : index
    %c0_3 = arith.constant 0 : index
    %4 = vector.load %arg3[%c0_2, %c0_3] : memref<128x256xbf16, #tpu.memory_space<vmem>>, vector<128x256xbf16>
    %c0_4 = arith.constant 0 : index
    %c0_5 = arith.constant 0 : index
    %5 = vector.load %arg4[%c0_4, %c0_5] : memref<256x128xbf16, #tpu.memory_space<vmem>>, vector<256x128xbf16>
    %cst = arith.constant dense<0.000000e+00> : vector<128x128xf32>
    %6 = tpu.matmul %4, %5, %cst {dimension_numbers = #tpu.dot_dimension_numbers<[1], [0], [0], [1], [0, 0, 1, 1], [], []>} : vector<128x256xbf16>, vector<256x128xbf16>, vector<128x128xf32> -> vector<128x128xf32>
    %7 = arith.addf %3, %6 : vector<128x128xf32>
    %c0_6 = arith.constant 0 : index
    %c0_7 = arith.constant 0 : index
    %8 = vector.load %arg8[%c0_6, %c0_7] : memref<128x128xf32, #tpu.memory_space<vmem>>, vector<128x128xf32>
    tpu.vector_store %arg8[%c0_6, %c0_7], %7 {strides = array<i32>} : memref<128x128xf32, #tpu.memory_space<vmem>>, vector<128x128xf32>,
    %c0_i32_8 = arith.constant 0 : i32
    %9 = arith.cmpi eq, %arg2, %c0_i32_8 : i32
    %10 = arith.extui %9 : i1 to i32
    %c0_i32_9 = arith.constant 0 : i32
    %11 = arith.cmpi ne, %10, %c0_i32_9 : i32
    scf.if %11 {
      %c0_10 = arith.constant 0 : index
      %c0_11 = arith.constant 0 : index
      %12 = vector.load %arg8[%c0_10, %c0_11] : memref<128x128xf32, #tpu.memory_space<vmem>>, vector<128x128xf32>
      %c0_12 = arith.constant 0 : index
      %c0_13 = arith.constant 0 : index
      %13 = vector.load %arg5[%c0_12, %c0_13] : memref<1x128xf32, #tpu.memory_space<vmem>>, vector<1x128xf32>
      %14 = vector.broadcast %13 : vector<1x128xf32> to vector<128x128xf32>
      %15 = arith.mulf %12, %14 : vector<128x128xf32>
      %c0_14 = arith.constant 0 : index
      %c0_15 = arith.constant 0 : index
      %16 = vector.load %arg6[%c0_14, %c0_15] : memref<1x128xf32, #tpu.memory_space<vmem>>, vector<1x128xf32>
      %17 = vector.broadcast %16 : vector<1x128xf32> to vector<128x128xf32>
      %18 = arith.addf %15, %17 : vector<128x128xf32>
      %cst_16 = arith.constant 0.000000e+00 : f32
      %19 = vector.broadcast %cst_16 : f32 to vector<128x128xf32>
      %20 = arith.maximumf %18, %19 : vector<128x128xf32>
      %21 = arith.truncf %20 : vector<128x128xf32> to vector<128x128xbf16>
      %c0_17 = arith.constant 0 : index
      %c0_18 = arith.constant 0 : index
      %22 = vector.load %arg7[%c0_17, %c0_18] : memref<128x128xbf16, #tpu.memory_space<vmem>>, vector<128x128xbf16>
      tpu.vector_store %arg7[%c0_17, %c0_18], %21 {strides = array<i32>} : memref<128x128xbf16, #tpu.memory_space<vmem>>, vector<128x128xbf16>,
    } else {
    }
    return
  }
  func.func @transform_0(%arg0: i32, %arg1: i32, %arg2: i32) -> (i32, i32) {
    %c0_i32 = arith.constant 0 : i32
    return %arg0, %arg2 : i32, i32
  }
  func.func @transform_1(%arg0: i32, %arg1: i32, %arg2: i32) -> (i32, i32) {
    %c0_i32 = arith.constant 0 : i32
    return %arg2, %arg1 : i32, i32
  }
  func.func @transform_2(%arg0: i32, %arg1: i32, %arg2: i32) -> (i32, i32) {
    %c0_i32 = arith.constant 0 : i32
    %c0_i32_0 = arith.constant 0 : i32
    return %c0_i32, %arg1 : i32, i32
  }
  func.func @transform_3(%arg0: i32, %arg1: i32, %arg2: i32) -> (i32, i32) {
    %c0_i32 = arith.constant 0 : i32
    %c0_i32_0 = arith.constant 0 : i32
    return %c0_i32, %arg1 : i32, i32
  }
  func.func @transform_4(%arg0: i32, %arg1: i32, %arg2: i32) -> (i32, i32) {
    %c0_i32 = arith.constant 0 : i32
    return %arg0, %arg1 : i32, i32
  }
}

</mosaic_0001>

<bundles_post_ra>
// kernel: tpu_custom_call.1
= control target key start
LH: loop header
LB: loop body
LE: loop exit
PB: predicated region body
PF: predicated region fallthrough
CT: control target
= control target key end

     0   :  { %9 = vsyncpa [#allocation4], 0  ;;  %s966_s0 = inlined_call_operand.hbm [shape: bf16[128,256], index: 0, kind: input, shape index: {}]   ;;  %s967_s1 = inlined_call_operand.hbm [shape: bf16[256,128], index: 1, kind: input, shape index: {}]   ;;  %s968_s2 = inlined_call_operand.vmem [shape: f32[1,128], index: 2, kind: input, shape index: {}]   ;;  %s969_s3 = inlined_call_operand.vmem [shape: f32[1,128], index: 3, kind: input, shape index: {}]   ;;  %s970_s4 = inlined_call_operand.hbm [shape: bf16[128,128], index: 4, kind: output, shape index: {}]  }
   0x1   :  { %10 = vsyncpa [#allocation7], 0 }
   0x2   :  { %11 = vsyncpa [#allocation5], 0  ;;  %s16_s17 = sshll.u32 %s966_s0, 4  ;;  %s877_s18 = smov [#allocation3]   ;;  %s17_s17 = int_to_ptr.hbm [resolvable:$true] %s16_s17 }
   0x3   :  { %s18_s19 = sshll.u32 %s877_s18, 4  ;;  %s29_s22 = sshll.u32 %s967_s1, 4  ;;  %s19_s19 = int_to_ptr.vmem [resolvable:$true] %s18_s19  ;;  %s30_s22 = int_to_ptr.hbm [resolvable:$true] %s29_s22 }
   0x4   :  { %s878_s23 = smov 128   ;;  %s879_s24 = smov 8  }
   0x5   :  { %24 = dma.hbm_to_vmem [thread:$0]  %s17_s17, 2048, %s19_s19, [#allocation4], %s878_s23, %s878_s23, %s879_s24  }
   0x6   :  { %s880_s25 = smov [#allocation6]   ;;  %s881_s27 = smov 64  }
   0x7   :  { %s31_s26 = sshll.u32 %s880_s25, 4  ;;  %s882_s28 = smov 4   ;;  %s32_s26 = int_to_ptr.vmem [resolvable:$true] %s31_s26 }
   0x8   :  { %37 = dma.hbm_to_vmem [thread:$0]  %s30_s22, 2048, %s32_s26, [#allocation7], %s881_s27, %s881_s27, %s882_s28  }
   0x9   :  { %871 = dma.done.wait [#allocation4], 2048  }
   0xa   :  { %872 = vsyncadd [#allocation4], 4294965248 }
   0xb   :  { %873 = dma.done.wait [#allocation7], 2048  }
   0xc   :  { %874 = vsyncadd [#allocation7], 4294965248  ;;  %v718_v0 = vld [vmem:[#allocation6 + $0x38] sm:$0xff]  ;;  %v717_v2 = vld [vmem:[#allocation6 + $0x30] sm:$0xff]  ;;  %s553_s7 = sshll.u32 %s970_s4, 4  ;;  %s554_s7 = int_to_ptr.hbm [resolvable:$true] %s553_s7 }
   0xd   :  { %v726_v1 = vld [vmem:[#allocation6 + $0x78] sm:$0xff]  ;;  %310 = vmatpush.bf16.msra.mxu0 %v718_v0  ;;  %774 = vmatpush.bf16.msra.mxu2 %v718_v0  ;;  %v725_v3 = vld [vmem:[#allocation6 + $0x70] sm:$0xff]  ;;  %v716_v4 = vld [vmem:[#allocation6 + $0x28] sm:$0xff] }
   0xe   :  { %359 = vmatpush.bf16.msra.mxu1 %v726_v1  ;;  %782 = vmatpush.bf16.msra.mxu3 %v726_v1  ;;  %v724_v5 = vld [vmem:[#allocation6 + $0x68] sm:$0xff]  ;;  %v715_v6 = vld [vmem:[#allocation6 + $0x20] sm:$0xff]  ;;  %v714_v8 = vld [vmem:[#allocation6 + $0x18] sm:$0xff] }
   0xf   :  { %v723_v7 = vld [vmem:[#allocation6 + $0x60] sm:$0xff]  ;;  %v722_v9 = vld [vmem:[#allocation6 + $0x58] sm:$0xff]  ;;  %v713_v10 = vld [vmem:[#allocation6 + $0x10] sm:$0xff] }
  0x10   :  { %v721_v11 = vld [vmem:[#allocation6 + $0x50] sm:$0xff]  ;;  %v712_v12 = vld [vmem:[#allocation6 + $0x8] sm:$0xff]  ;;  %v711_v14 = vld [vmem:[#allocation6] sm:$0xff] }
  0x11   :  { %311 = vmatpush.bf16.msra.mxu0 %v717_v2  ;;  %775 = vmatpush.bf16.msra.mxu2 %v717_v2  ;;  %v720_v13 = vld [vmem:[#allocation6 + $0x48] sm:$0xff]  ;;  %v719_v15 = vld [vmem:[#allocation6 + $0x40] sm:$0xff]  ;;  %v577_v28 = vld [vmem:[#allocation3 + $0x10] sm:$0xf] }
  0x12   :  { %360 = vmatpush.bf16.msra.mxu1 %v725_v3  ;;  %783 = vmatpush.bf16.msra.mxu3 %v725_v3  ;;  %v569_v16 = vld [vmem:[#allocation3] sm:$0xf]  ;;  %v696_v17 = vld [vmem:[#allocation3 + $0x4] sm:$0xf0]  ;;  %v695_v20 = vld [vmem:[#allocation3 + $0x4] sm:$0xf] }
  0x13   :  { %v601_v18 = vld [vmem:[#allocation3 + $0x40] sm:$0xf]  ;;  %v704_v19 = vld [vmem:[#allocation3 + $0x44] sm:$0xf0]  ;;  %v571_v21 = vld [vmem:[#allocation3 + $0x8] sm:$0xf0]  ;;  %v570_v24 = vor.u32 %v696_v17, %v569_v16 }
  0x14   :  { %v703_v22 = vld [vmem:[#allocation3 + $0x44] sm:$0xf]  ;;  %v603_v23 = vld [vmem:[#allocation3 + $0x48] sm:$0xf0]  ;;  %v602_v25 = vor.u32 %v704_v19, %v601_v18  ;;  %v574_v26 = vor.u32 %v695_v20, %v571_v21  ;;  %v698_v29 = vld [vmem:[#allocation3 + $0x14] sm:$0xf0] }
  0x15   :  { %312 = vmatpush.bf16.msra.mxu0 %v716_v4  ;;  %776 = vmatpush.bf16.msra.mxu2 %v716_v4  ;;  %v606_v27 = vor.u32 %v703_v22, %v603_v23  ;;  %v609_v30 = vld [vmem:[#allocation3 + $0x50] sm:$0xf]  ;;  %v706_v31 = vld [vmem:[#allocation3 + $0x54] sm:$0xf0]  ;;  %v697_v32 = vld [vmem:[#allocation3 + $0x14] sm:$0xf]  ;;  %v578_v36 = vor.u32 %v698_v29, %v577_v28 }
  0x16   :  { %361 = vmatpush.bf16.msra.mxu1 %v724_v5  ;;  %784 = vmatpush.bf16.msra.mxu3 %v724_v5  ;;  %v579_v33 = vld [vmem:[#allocation3 + $0x18] sm:$0xf0]  ;;  %v705_v34 = vld [vmem:[#allocation3 + $0x54] sm:$0xf]  ;;  %v610_v37 = vor.u32 %v706_v31, %v609_v30  ;;  %v585_v40 = vld [vmem:[#allocation3 + $0x20] sm:$0xf] }
  0x17   :  { %v611_v35 = vld [vmem:[#allocation3 + $0x58] sm:$0xf0]  ;;  %v582_v38 = vor.u32 %v697_v32, %v579_v33  ;;  %v700_v41 = vld [vmem:[#allocation3 + $0x24] sm:$0xf0]  ;;  %v617_v42 = vld [vmem:[#allocation3 + $0x60] sm:$0xf] }
  0x18   :  { %v614_v39 = vor.u32 %v705_v34, %v611_v35  ;;  %v708_v43 = vld [vmem:[#allocation3 + $0x64] sm:$0xf0]  ;;  %v699_v44 = vld [vmem:[#allocation3 + $0x24] sm:$0xf]  ;;  %v587_v45 = vld [vmem:[#allocation3 + $0x28] sm:$0xf0]  ;;  %v586_v48 = vor.u32 %v700_v41, %v585_v40 }
  0x19   :  { %313 = vmatpush.bf16.msra.mxu0 %v715_v6  ;;  %777 = vmatpush.bf16.msra.mxu2 %v715_v6  ;;  %v707_v46 = vld [vmem:[#allocation3 + $0x64] sm:$0xf]  ;;  %v619_v47 = vld [vmem:[#allocation3 + $0x68] sm:$0xf0]  ;;  %v618_v49 = vor.u32 %v708_v43, %v617_v42  ;;  %v590_v50 = vor.u32 %v699_v44, %v587_v45  ;;  %v593_v52 = vld [vmem:[#allocation3 + $0x30] sm:$0xf] }
  0x1a   :  { %362 = vmatpush.bf16.msra.mxu1 %v723_v7  ;;  %785 = vmatpush.bf16.msra.mxu3 %v723_v7  ;;  %v622_v51 = vor.u32 %v707_v46, %v619_v47  ;;  %v702_v53 = vld [vmem:[#allocation3 + $0x34] sm:$0xf0]  ;;  %v625_v54 = vld [vmem:[#allocation3 + $0x70] sm:$0xf]  ;;  %v701_v56 = vld [vmem:[#allocation3 + $0x34] sm:$0xf] }
  0x1b   :  { %v710_v55 = vld [vmem:[#allocation3 + $0x74] sm:$0xf0]  ;;  %v595_v57 = vld [vmem:[#allocation3 + $0x38] sm:$0xf0]  ;;  %v709_v58 = vld [vmem:[#allocation3 + $0x74] sm:$0xf]  ;;  %v594_v60 = vor.u32 %v702_v53, %v593_v52 }
  0x1c   :  { %v627_v59 = vld [vmem:[#allocation3 + $0x78] sm:$0xf0]  ;;  %v626_v61 = vor.u32 %v710_v55, %v625_v54  ;;  %v598_v62 = vor.u32 %v701_v56, %v595_v57  ;;  %v921_v3 = vld [vmem:[%s968_s2] ss:$0 sm:$0xff]  ;;  %s883_s2 = smov [#allocation8]  }
  0x1d   :  { %314 = vmatpush.bf16.msra.mxu0 %v714_v8  ;;  %778 = vmatpush.bf16.msra.mxu2 %v714_v8  ;;  %v630_v63 = vor.u32 %v709_v58, %v627_v59  ;;  %v927_v7 = vld [vmem:[%s969_s3] ss:$0 sm:$0xff]  ;;  %s551_s3 = sshll.u32 %s883_s2, 4  ;;  %s552_s3 = int_to_ptr.vmem [resolvable:$true] %s551_s3 }
  0x1e   :  { %363 = vmatpush.bf16.msra.mxu1 %v722_v9  ;;  %786 = vmatpush.bf16.msra.mxu3 %v722_v9 }
  0x21   :  { %315 = vmatpush.bf16.msra.mxu0 %v713_v10  ;;  %779 = vmatpush.bf16.msra.mxu2 %v713_v10 }
  0x22   :  { %364 = vmatpush.bf16.msra.mxu1 %v721_v11  ;;  %787 = vmatpush.bf16.msra.mxu3 %v721_v11 }
  0x25   :  { %316 = vmatpush.bf16.msra.mxu0 %v712_v12  ;;  %780 = vmatpush.bf16.msra.mxu2 %v712_v12 }
  0x26   :  { %365 = vmatpush.bf16.msra.mxu1 %v720_v13  ;;  %788 = vmatpush.bf16.msra.mxu3 %v720_v13 }
  0x29   :  { %317 = vmatpush.bf16.msra.mxu0 %v711_v14  ;;  %781 = vmatpush.bf16.msra.mxu2 %v711_v14 }
  0x2a   :  { %366 = vmatpush.bf16.msra.mxu1 %v719_v15  ;;  %789 = vmatpush.bf16.msra.mxu3 %v719_v15 }
  0x2c   :  { %318 = vmatmul.bf16.vlgmr.msra.gmra.mxu0 %v570_v24  ;;  %338 = vmatmul.bf16.vlgmr.msra.gmra.mxu2 %v602_v25 }
  0x2d   :  { %367 = vmatmul.bf16.vlgmr.msra.gmra.mxu1 %v574_v26  ;;  %387 = vmatmul.bf16.vlgmr.msra.gmra.mxu3 %v606_v27 }
  0x3c   :  { %323 = vmatmul.bf16.gmra.mxu0 %v578_v36  ;;  %343 = vmatmul.bf16.gmra.mxu2 %v610_v37 }
  0x3d   :  { %372 = vmatmul.bf16.gmra.mxu1 %v582_v38  ;;  %392 = vmatmul.bf16.gmra.mxu3 %v614_v39 }
  0x4c   :  { %328 = vmatmul.bf16.gmra.mxu0 %v586_v48  ;;  %348 = vmatmul.bf16.gmra.mxu2 %v618_v49 }
  0x4d   :  { %377 = vmatmul.bf16.gmra.mxu1 %v590_v50  ;;  %397 = vmatmul.bf16.gmra.mxu3 %v622_v51 }
  0x5c   :  { %333 = vmatmul.bf16.gmra.mxu0 %v594_v60  ;;  %353 = vmatmul.bf16.gmra.mxu2 %v626_v61 }
  0x5d   :  { %382 = vmatmul.bf16.gmra.mxu1 %v598_v62  ;;  %402 = vmatmul.bf16.gmra.mxu3 %v630_v63 }
  0xa9   :  { %v319_v0 = vpop.f32.mrf.mxu0 }
  0xaa   :  { %v368_v1 = vpop.f32.mrf.mxu1 }
  0xab   :  { %v369_v2 = vadd.f32 %v368_v1, %v319_v0 }
  0xad   :  { %v463_v6 = vmul.f32 %v921_v3, %v369_v2 }
  0xaf   :  { %v339_v4 = vpop.f32.mrf.mxu2  ;;  %v483_v12 = vadd.f32 %v927_v7, %v463_v6 }
  0xb0   :  { %v388_v5 = vpop.f32.mrf.mxu3 }
  0xb1   :  { %v321_v8 = vpop.f32.mrf.mxu0  ;;  %v389_v10 = vadd.f32 %v388_v5, %v339_v4  ;;  %v499_v18 = vmax.f32 %v483_v12, 0.0 }
  0xb2   :  { %v370_v9 = vpop.f32.mrf.mxu1 }
  0xb3   :  { %v371_v11 = vadd.f32 %v370_v9, %v321_v8  ;;  %v471_v14 = vmul.f32 %v921_v3, %v389_v10 }
  0xb5   :  { %v464_v13 = vmul.f32 %v921_v3, %v371_v11  ;;  %v491_v23 = vadd.f32 %v927_v7, %v471_v14 }
  0xb7   :  { %v484_v15 = vadd.f32 %v927_v7, %v464_v13  ;;  %v341_v16 = vpop.f32.mrf.mxu2  ;;  %v507_v28 = vmax.f32 %v491_v23, 0.0 }
  0xb8   :  { %v390_v17 = vpop.f32.mrf.mxu3 }
  0xb9   :  { %v500_v19 = vmax.f32 %v484_v15, 0.0  ;;  %v391_v20 = vadd.f32 %v390_v17, %v341_v16  ;;  %v324_v21 = vpop.f32.mrf.mxu0 }
  0xba   :  { %v373_v22 = vpop.f32.mrf.mxu1 }
  0xbb   :  { %v730_v24 = vpack.c.bf16 %v500_v19, %v499_v18  ;;  %v472_v25 = vmul.f32 %v921_v3, %v391_v20  ;;  %v374_v27 = vadd.f32 %v373_v22, %v324_v21 }
  0xbd   :  { %731 = vst [vmem:[#allocation8] sm:$0xff] %v730_v24   ;;  %v492_v26 = vadd.f32 %v927_v7, %v472_v25  ;;  %v465_v33 = vmul.f32 %v921_v3, %v374_v27 }
  0xbf   :  { %v508_v29 = vmax.f32 %v492_v26, 0.0  ;;  %v344_v30 = vpop.f32.mrf.mxu2  ;;  %v485_v38 = vadd.f32 %v927_v7, %v465_v33 }
  0xc0   :  { %v393_v31 = vpop.f32.mrf.mxu3 }
  0xc1   :  { %v750_v32 = vpack.c.bf16 %v508_v29, %v507_v28  ;;  %v326_v34 = vpop.f32.mrf.mxu0  ;;  %v394_v36 = vadd.f32 %v393_v31, %v344_v30  ;;  %v501_v44 = vmax.f32 %v485_v38, 0.0 }
  0xc2   :  { %v375_v35 = vpop.f32.mrf.mxu1 }
  0xc3   :  { %770 = vst [vmem:[#allocation8 + $0x20] sm:$0xff] %v750_v32   ;;  %v376_v37 = vadd.f32 %v375_v35, %v326_v34  ;;  %v473_v40 = vmul.f32 %v921_v3, %v394_v36 }
  0xc5   :  { %v466_v39 = vmul.f32 %v921_v3, %v376_v37  ;;  %v493_v49 = vadd.f32 %v927_v7, %v473_v40 }
  0xc7   :  { %v486_v41 = vadd.f32 %v927_v7, %v466_v39  ;;  %v346_v42 = vpop.f32.mrf.mxu2  ;;  %v509_v54 = vmax.f32 %v493_v49, 0.0 }
  0xc8   :  { %v395_v43 = vpop.f32.mrf.mxu3 }
  0xc9   :  { %v502_v45 = vmax.f32 %v486_v41, 0.0  ;;  %v396_v46 = vadd.f32 %v395_v43, %v346_v42  ;;  %v329_v47 = vpop.f32.mrf.mxu0 }
  0xca   :  { %v378_v48 = vpop.f32.mrf.mxu1 }
  0xcb   :  { %v735_v50 = vpack.c.bf16 %v502_v45, %v501_v44  ;;  %v474_v51 = vmul.f32 %v921_v3, %v396_v46  ;;  %v379_v53 = vadd.f32 %v378_v48, %v329_v47 }
  0xcd   :  { %767 = vst [vmem:[#allocation8 + $0x8] sm:$0xff] %v735_v50   ;;  %v494_v52 = vadd.f32 %v927_v7, %v474_v51  ;;  %v467_v59 = vmul.f32 %v921_v3, %v379_v53 }
  0xcf   :  { %v510_v55 = vmax.f32 %v494_v52, 0.0  ;;  %v349_v56 = vpop.f32.mrf.mxu2  ;;  %v487_v0 = vadd.f32 %v927_v7, %v467_v59 }
  0xd0   :  { %v398_v57 = vpop.f32.mrf.mxu3 }
  0xd1   :  { %v755_v58 = vpack.c.bf16 %v510_v55, %v509_v54  ;;  %v331_v60 = vpop.f32.mrf.mxu0  ;;  %v399_v62 = vadd.f32 %v398_v57, %v349_v56  ;;  %v503_v8 = vmax.f32 %v487_v0, 0.0 }
  0xd2   :  { %v380_v61 = vpop.f32.mrf.mxu1 }
  0xd3   :  { %771 = vst [vmem:[#allocation8 + $0x28] sm:$0xff] %v755_v58   ;;  %v381_v63 = vadd.f32 %v380_v61, %v331_v60  ;;  %v475_v2 = vmul.f32 %v921_v3, %v399_v62 }
  0xd5   :  { %v468_v1 = vmul.f32 %v921_v3, %v381_v63  ;;  %v495_v13 = vadd.f32 %v927_v7, %v475_v2 }
  0xd7   :  { %v488_v4 = vadd.f32 %v927_v7, %v468_v1  ;;  %v351_v5 = vpop.f32.mrf.mxu2  ;;  %v511_v18 = vmax.f32 %v495_v13, 0.0 }
  0xd8   :  { %v400_v6 = vpop.f32.mrf.mxu3 }
  0xd9   :  { %v504_v9 = vmax.f32 %v488_v4, 0.0  ;;  %v401_v10 = vadd.f32 %v400_v6, %v351_v5  ;;  %v334_v11 = vpop.f32.mrf.mxu0 }
  0xda   :  { %v383_v12 = vpop.f32.mrf.mxu1 }
  0xdb   :  { %v740_v14 = vpack.c.bf16 %v504_v9, %v503_v8  ;;  %v476_v15 = vmul.f32 %v921_v3, %v401_v10  ;;  %v384_v17 = vadd.f32 %v383_v12, %v334_v11 }
  0xdd   :  { %768 = vst [vmem:[#allocation8 + $0x10] sm:$0xff] %v740_v14   ;;  %v496_v16 = vadd.f32 %v927_v7, %v476_v15  ;;  %v469_v23 = vmul.f32 %v921_v3, %v384_v17 }
  0xdf   :  { %v512_v19 = vmax.f32 %v496_v16, 0.0  ;;  %v354_v20 = vpop.f32.mrf.mxu2  ;;  %v489_v28 = vadd.f32 %v927_v7, %v469_v23 }
  0xe0   :  { %v403_v21 = vpop.f32.mrf.mxu3 }
  0xe1   :  { %v760_v22 = vpack.c.bf16 %v512_v19, %v511_v18  ;;  %v336_v24 = vpop.f32.mrf.mxu0  ;;  %v404_v26 = vadd.f32 %v403_v21, %v354_v20  ;;  %v505_v34 = vmax.f32 %v489_v28, 0.0 }
  0xe2   :  { %v385_v25 = vpop.f32.mrf.mxu1 }
  0xe3   :  { %772 = vst [vmem:[#allocation8 + $0x30] sm:$0xff] %v760_v22   ;;  %v386_v27 = vadd.f32 %v385_v25, %v336_v24  ;;  %v477_v30 = vmul.f32 %v921_v3, %v404_v26 }
  0xe5   :  { %v470_v29 = vmul.f32 %v921_v3, %v386_v27  ;;  %v497_v37 = vadd.f32 %v927_v7, %v477_v30 }
  0xe7   :  { %v490_v31 = vadd.f32 %v927_v7, %v470_v29  ;;  %v356_v32 = vpop.f32.mrf.mxu2  ;;  %v513_v41 = vmax.f32 %v497_v37, 0.0 }
  0xe8   :  { %v405_v33 = vpop.f32.mrf.mxu3 }
  0xe9   :  { %v506_v35 = vmax.f32 %v490_v31, 0.0  ;;  %v406_v36 = vadd.f32 %v405_v33, %v356_v32 }
  0xeb   :  { %v745_v38 = vpack.c.bf16 %v506_v35, %v505_v34  ;;  %v478_v39 = vmul.f32 %v921_v3, %v406_v36 }
  0xed   :  { %769 = vst [vmem:[#allocation8 + $0x18] sm:$0xff] %v745_v38   ;;  %v498_v40 = vadd.f32 %v927_v7, %v478_v39 }
  0xef   :  { %v514_v42 = vmax.f32 %v498_v40, 0.0 }
  0xf1   :  { %v765_v43 = vpack.c.bf16 %v514_v42, %v513_v41 }
  0xf3   :  { %773 = vst [vmem:[#allocation8 + $0x38] sm:$0xff] %v765_v43  }
  0xf4   :  { %559 = dma.vmem_to_hbm [thread:$0]  %s552_s3, 1024, %s554_s7, [#allocation5], %s881_s27, %s881_s27, %s882_s28  }
  0xf5   :  { %875 = dma.done.wait [#allocation5], 1024  }
  0xf6   :  { %876 = vsyncadd [#allocation5], 4294966272 }
  0xf7   :  { %564 = vsyncpa [#allocation4], 1 }
  0xf8   :  { %565 = vsyncpa [#allocation7], 1 }
  0xf9   :  { %566 = vsyncpa [#allocation5], 1 }

</bundles_post_ra>
